<compile_context>
chip_gen: v6e
topology: v6e:2x2x1
jax: 0.10.0
libtpu: 0.0.40
codegen_flags: <defaults>
</compile_context>

<pallas_src>
import functools
import math

import jax
import jax.numpy as jnp
from jax.experimental import pallas as pl
from jax.experimental.pallas import tpu as pltpu


_SPLIT_BYTES = 256 * 1024  # only force >=2 grid steps (megacore) above this size


def _round_up(v, m):
    return ((v + m - 1) // m) * m


def _vmem_capacity_bytes():
    try:
        info = pltpu.get_tpu_info()
        cap = getattr(info, "vmem_capacity_bytes", None)
        if cap:
            return int(cap)
    except Exception:
        pass
    return 64 << 20  # conservative (v7x per-TC VMEM)


def _softmax_lane_kernel(x_ref, o_ref, *, inv_temperature, scale_before_max):
    # Block (row_tile, C): softmax over the last (lane) axis.
    x = x_ref[...].astype(jnp.float32)
    if scale_before_max:  # temperature <= 0: max/min flips, keep original order.
        x = x * inv_temperature
        m = jnp.max(x, axis=-1, keepdims=True)
        e = jnp.exp(x - m)
    else:  # temperature > 0: fold 1/T into the exponent (saves a block-wide mul).
        m = jnp.max(x, axis=-1, keepdims=True)
        e = jnp.exp((x - m) * inv_temperature)
    s = jnp.sum(e, axis=-1, keepdims=True)
    o_ref[...] = (e * pl.reciprocal(s, approx=False)).astype(o_ref.dtype)


def _softmax_sublane_kernel(x_ref, o_ref, *, inv_temperature, scale_before_max):
    # Block (pre_tile, C, lane_tile): softmax over axis=-2; lanes stay dense.
    x = x_ref[...].astype(jnp.float32)
    if scale_before_max:
        x = x * inv_temperature
        m = jnp.max(x, axis=-2, keepdims=True)
        e = jnp.exp(x - m)
    else:
        m = jnp.max(x, axis=-2, keepdims=True)
        e = jnp.exp((x - m) * inv_temperature)
    s = jnp.sum(e, axis=-2, keepdims=True)
    o_ref[...] = (e * pl.reciprocal(s, approx=False)).astype(o_ref.dtype)


def softmax_with_temperature(x, dim, temperature, *, target_block_bytes=None):
    """Pallas implementation of SoftmaxWithTemperature.forward."""
    ndim = x.ndim
    dim = dim % ndim
    shape = x.shape

    C = shape[dim]
    pre = math.prod(shape[:dim])
    post = math.prod(shape[dim + 1:])

    inv_t = 1.0 / float(temperature)
    scale_before_max = not (inv_t > 0.0)

    itemsize = jnp.dtype(x.dtype).itemsize
    # Sublane packing: 8 rows for 32-bit, 16 for bf16, 32 for int8.
    sub = max(8, 32 // itemsize)

    vmem_cap = _vmem_capacity_bytes()
    # 96 MiB scoped limit on 128-MiB-VMEM chips (v5e/v6e), 48 MiB on v7x.
    vmem_limit = min((vmem_cap * 3) // 4, 96 << 20)
    if target_block_bytes is None:
        target_block_bytes = (4 << 20) if vmem_cap >= (128 << 20) else (2 << 20)
    vmem_budget = vmem_limit - (4 << 20)  # headroom for small scratch / stack

    total_bytes = pre * C * post * itemsize

    if post == 1:
        # ---- Lane-reduction path: softmax axis is (effectively) the last axis.
        x2 = x.reshape(pre, C)
        C_lane_pad = _round_up(C, 128)  # lane padding of the resident block
        # Per-row VMEM: double-buffered in+out blocks + two block-sized f32 temps.
        per_row_vmem = C_lane_pad * (4 * itemsize + 2 * 4)

        rows = max(sub, (target_block_bytes // max(1, C_lane_pad * itemsize)) // sub * sub)
        row_tile = min(pre, rows)
        # Shrink until the VMEM estimate fits the budget.
        while row_tile > sub and row_tile * per_row_vmem > vmem_budget:
            row_tile = max(sub, (row_tile // 2) // sub * sub)
        # TODO(synk): for extremely large C (budget exceeded even at row_tile==sub),
        # an online / two-pass softmax over a C grid axis ("arbitrary") is needed.

        # Megacore: guarantee >= 2 parallel grid steps on non-trivial tensors.
        if pl.cdiv(pre, row_tile) < 2 and pre > sub and total_bytes >= _SPLIT_BYTES:
            row_tile = min(row_tile, _round_up(pl.cdiv(pre, 2), sub))

        est = row_tile * per_row_vmem
        vmem_limit = max(vmem_limit, min(vmem_cap - (4 << 20), est + (8 << 20)))

        grid = (pl.cdiv(pre, row_tile),)
        out2 = pl.pallas_call(
            functools.partial(
                _softmax_lane_kernel,
                inv_temperature=inv_t,
                scale_before_max=scale_before_max,
            ),
            out_shape=jax.ShapeDtypeStruct((pre, C), x.dtype),
            grid_spec=pltpu.PrefetchScalarGridSpec(
                num_scalar_prefetch=0,
                grid=grid,
                in_specs=[pl.BlockSpec((row_tile, C), lambda i: (i, 0))],
                out_specs=pl.BlockSpec((row_tile, C), lambda i: (i, 0)),
            ),
            compiler_params=pltpu.CompilerParams(
                dimension_semantics=("parallel",),
                vmem_limit_bytes=int(vmem_limit),
            ),
        )(x2)
        return out2.reshape(shape)

    # ---- Sublane-reduction path: trailing dims stay on lanes, reduce over axis=-2.
    x3 = x.reshape(pre, C, post)
    C_sub_pad = _round_up(C, sub)  # sublane padding of the reduction axis

    if post <= 128 or C * post * itemsize <= target_block_bytes:
        lane_tile = post  # full extent -> always legal
    else:
        lane_tile = max(
            128,
            min(post, target_block_bytes // max(1, C_sub_pad * itemsize)) // 128 * 128,
        )
    lane_pad = _round_up(lane_tile, 128)

    def slab_vmem(lt_pad):
        # Per pre-row: double-buffered in+out blocks + two block-sized f32 temps,
        # using the *padded* C / lane extents actually resident in VMEM.
        return C_sub_pad * lt_pad * (4 * itemsize + 2 * 4)

    pre_tile = max(
        1, min(pre, target_block_bytes // max(1, C_sub_pad * lane_pad * itemsize))
    )
    # Fit the VMEM budget: shrink pre_tile first, then lane_tile (128-aligned).
    while pre_tile > 1 and pre_tile * slab_vmem(lane_pad) > vmem_budget:
        pre_tile = max(1, pre_tile // 2)
    while lane_tile > 128 and pre_tile * slab_vmem(lane_pad) > vmem_budget:
        lane_tile = max(128, (lane_tile // 2) // 128 * 128)
        lane_pad = _round_up(lane_tile, 128)
    # TODO(synk): if C alone makes a single (1, C, 128) block exceed the budget,
    # an online softmax over a C grid axis ("arbitrary") would be required.

    # Megacore: guarantee >= 2 parallel grid steps on non-trivial tensors.
    g0, g1 = pl.cdiv(pre, pre_tile), pl.cdiv(post, lane_tile)
    if g0 * g1 < 2 and total_bytes >= _SPLIT_BYTES:
        if pre >= 2:
            pre_tile = pl.cdiv(pre, 2)
        elif post > 128:
            new_lane = _round_up(pl.cdiv(post, 2), 128)
            if new_lane < post:
                lane_tile = new_lane
    lane_pad = _round_up(lane_tile, 128)

    est = pre_tile * slab_vmem(lane_pad)
    vmem_limit = max(vmem_limit, min(vmem_cap - (4 << 20), est + (8 << 20)))

    grid = (pl.cdiv(pre, pre_tile), pl.cdiv(post, lane_tile))
    out3 = pl.pallas_call(
        functools.partial(
            _softmax_sublane_kernel,
            inv_temperature=inv_t,
            scale_before_max=scale_before_max,
        ),
        out_shape=jax.ShapeDtypeStruct((pre, C, post), x.dtype),
        grid_spec=pltpu.PrefetchScalarGridSpec(
            num_scalar_prefetch=0,
            grid=grid,
            in_specs=[
                pl.BlockSpec((pre_tile, C, lane_tile), lambda p, l: (p, 0, l))
            ],
            out_specs=pl.BlockSpec((pre_tile, C, lane_tile), lambda p, l: (p, 0, l)),
        ),
        compiler_params=pltpu.CompilerParams(
            dimension_semantics=("parallel", "parallel"),
            vmem_limit_bytes=int(vmem_limit),
        ),
    )(x3)
    return out3.reshape(shape)


def softmax_with_temperature_ref(x, dim, temperature):
    return jax.nn.softmax(x.astype(jnp.float32) / temperature, axis=dim).astype(x.dtype)


if __name__ == "__main__":
    key = jax.random.PRNGKey(0)
    k0, k1 = jax.random.split(key)

    # SoftmaxWithTemperature(dim=1, temperature=0.5) on a small NCHW tensor:
    # exercises the sublane-reduction path (C=4 kept off the lane axis).
    x = jax.random.normal(k0, (2, 4, 16, 16), dtype=jnp.float32)
    dim = 1
    temperature = 0.5

    y = softmax_with_temperature(x, dim, temperature)
    jax.block_until_ready(y)
    y_ref = softmax_with_temperature_ref(x, dim, temperature)
    assert y.shape == x.shape
    assert jnp.allclose(y, y_ref, atol=1e-5, rtol=1e-5), "mismatch vs reference (dim=1)"

    # Also exercise the last-axis (lane-reduction) path.
    x2 = jax.random.normal(k1, (2, 8, 32), dtype=jnp.float32)
    y2 = softmax_with_temperature(x2, -1, temperature)
    jax.block_until_ready(y2)
    y2_ref = softmax_with_temperature_ref(x2, -1, temperature)
    assert jnp.allclose(y2, y2_ref, atol=1e-5, rtol=1e-5), "mismatch vs reference (dim=-1)"

    print("KERNEL_OK")
</pallas_src>

<mosaic_0001>
module attributes {stable_mosaic.version = 11 : i64} {
  func.func @_softmax_sublane_kernel(%arg0: i32, %arg1: i32, %arg2: memref<2x4x256xf32, #tpu.memory_space<vmem>>, %arg3: memref<2x4x256xf32, #tpu.memory_space<vmem>>) attributes {dimension_semantics = [#tpu.dimension_semantics<parallel>, #tpu.dimension_semantics<parallel>], iteration_bounds = array<i64: 1, 1>, scalar_prefetch = 0 : i64, scratch_operands = 0 : i64, tpu.core_type = #tpu.core_type<tc>, window_params = [{transform_indices = @transform_0, window_bounds = array<i64: 2, 4, 256>}, {transform_indices = @transform_1, window_bounds = array<i64: 2, 4, 256>}]} {
    %c0 = arith.constant 0 : index
    %c0_0 = arith.constant 0 : index
    %c0_1 = arith.constant 0 : index
    %0 = vector.load %arg2[%c0, %c0_0, %c0_1] : memref<2x4x256xf32, #tpu.memory_space<vmem>>, vector<2x4x256xf32>
    %cst = arith.constant dense<0xFF800000> : vector<2x256xf32>
    %1 = vector.multi_reduction <maximumf>, %0, %cst [1] : vector<2x4x256xf32> to vector<2x256xf32>
    %2 = vector.shape_cast %1 : vector<2x256xf32> to vector<2x1x256xf32>
    %3 = vector.broadcast %2 : vector<2x1x256xf32> to vector<2x4x256xf32>
    %4 = arith.subf %0, %3 : vector<2x4x256xf32>
    %cst_2 = arith.constant 2.000000e+00 : f32
    %5 = vector.broadcast %cst_2 : f32 to vector<2x4x256xf32>
    %6 = arith.mulf %4, %5 : vector<2x4x256xf32>
    %7 = math.exp %6 : vector<2x4x256xf32>
    %cst_3 = arith.constant dense<0.000000e+00> : vector<2x256xf32>
    %8 = vector.multi_reduction <add>, %7, %cst_3 [1] : vector<2x4x256xf32> to vector<2x256xf32>
    %9 = vector.shape_cast %8 : vector<2x256xf32> to vector<2x1x256xf32>
    %10 = tpu.reciprocal %9 : vector<2x1x256xf32> -> vector<2x1x256xf32>
    %11 = vector.broadcast %10 : vector<2x1x256xf32> to vector<2x4x256xf32>
    %12 = arith.mulf %7, %11 : vector<2x4x256xf32>
    %c0_4 = arith.constant 0 : index
    %c0_5 = arith.constant 0 : index
    %c0_6 = arith.constant 0 : index
    %13 = vector.load %arg3[%c0_4, %c0_5, %c0_6] : memref<2x4x256xf32, #tpu.memory_space<vmem>>, vector<2x4x256xf32>
    tpu.vector_store %arg3[%c0_4, %c0_5, %c0_6], %12 {strides = array<i32>} : memref<2x4x256xf32, #tpu.memory_space<vmem>>, vector<2x4x256xf32>,
    return
  }
  func.func @transform_0(%arg0: i32, %arg1: i32) -> (i32, i32, i32) {
    %c0_i32 = arith.constant 0 : i32
    %c0_i32_0 = arith.constant 0 : i32
    return %arg0, %c0_i32, %arg1 : i32, i32, i32
  }
  func.func @transform_1(%arg0: i32, %arg1: i32) -> (i32, i32, i32) {
    %c0_i32 = arith.constant 0 : i32
    %c0_i32_0 = arith.constant 0 : i32
    return %arg0, %c0_i32, %arg1 : i32, i32, i32
  }
}

</mosaic_0001>

<bundles_post_ra>
// kernel: tpu_custom_call.1
= control target key start
LH: loop header
LB: loop body
LE: loop exit
PB: predicated region body
PF: predicated region fallthrough
CT: control target
= control target key end

     0   :  { %6 = vsyncpa [#allocation3], 0  ;;  %s239_s0 = inlined_call_operand.hbm [shape: f32[2,4,256], index: 0, kind: input, shape index: {}]   ;;  %s240_s1 = inlined_call_operand.hbm [shape: f32[2,4,256], index: 1, kind: output, shape index: {}]  }
   0x1   :  { %7 = vsyncpa [#allocation4], 0  ;;  %s205_s6 = smov [#allocation2]  }
   0x2   :  { %s13_s7 = sshll.u32 %s205_s6, 4  ;;  %s14_s7 = int_to_ptr.vmem [resolvable:$true] %s13_s7 }
   0x3   :  { %s169_s8 = scalar_lea.vmem %s14_s7, 256  ;;  %p174_p1 = scmp.lt.s32.totalorder %s14_s7, %s14_s7 }
   0x4   :  { %p170_p0 = scmp.ne.s32.totalorder %s14_s7, %s169_s8  ;;  %p175_p2 = scmp.lt.s32.totalorder %s169_s8, %s169_s8 }
   0x6   :  { %p176_p3 = por %p175_p2, %p174_p1 }
   0x8   :  { %p177_p4 = pnand %p176_p3, %p170_p0 }
   0xa   :  { %180 = shalt.err (!%p177_p4)
}
   0xb   :  { %s206_s9 = smov 128   ;;  %s207_s10 = smov 8  }
   0xc   :  { %19 = dma.hbm_to_vmem [thread:$0]  %s239_s0, 256, %s14_s7, [#allocation3], %s206_s9, %s206_s9, %s207_s10  }
   0xd   :  { %201 = dma.done.wait [#allocation3], 256  }
   0xe   :  { %202 = vsyncadd [#allocation3], 4294967040  ;;  %vm31_vm0 = vcmask 1043456   ;;  %v23_v0 = vld [vmem:[#allocation2] sm:$0xff]  ;;  %v24_v1 = vld [vmem:[#allocation2 + $0x8] sm:$0xff]  ;;  %s208_s0 = smov [#allocation5]  }
   0xf   :  { %v27_v2 = vcombine.high %v23_v0, %v23_v0  ;;  %v32_v3 = vsel %vm31_vm0, %v23_v0, -inf  ;;  %v28_v4 = vcombine.high %v24_v1, %v24_v1  ;;  %v46_v5 = vsel %vm31_vm0, %v24_v1, -inf  ;;  %s131_s13 = sshll.u32 %s208_s0, 4  ;;  %s132_s13 = int_to_ptr.vmem [resolvable:$true] %s131_s13 }
  0x10   :  { %v33_v6 = vrot.slane %v32_v3, 4  ;;  %v47_v7 = vrot.slane %v46_v5, 4  ;;  %s181_s14 = scalar_lea.vmem %s132_s13, 256  ;;  %p186_p6 = scmp.lt.s32.totalorder %s132_s13, %s132_s13 }
  0x11   :  { %v39_v8 = vsel %vm31_vm0, %v27_v2, -inf  ;;  %v53_v9 = vsel %vm31_vm0, %v28_v4, -inf  ;;  %p182_p5 = scmp.ne.s32.totalorder %s132_s13, %s181_s14  ;;  %p187_p7 = scmp.lt.s32.totalorder %s181_s14, %s181_s14 }
  0x12   :  { %v34_v10 = vmax.f32 %v32_v3, %v33_v6  ;;  %v40_v11 = vrot.slane %v39_v8, 4  ;;  %v48_v12 = vmax.f32 %v46_v5, %v47_v7  ;;  %v54_v13 = vrot.slane %v53_v9, 4 }
  0x13   :  { %p188_p8 = por %p187_p7, %p186_p6 }
  0x14   :  { %v35_v14 = vrot.slane %v34_v10, 2  ;;  %v41_v15 = vmax.f32 %v39_v8, %v40_v11  ;;  %v49_v16 = vrot.slane %v48_v12, 2  ;;  %v55_v17 = vmax.f32 %v53_v9, %v54_v13 }
  0x15   :  { %p189_p9 = pnand %p188_p8, %p182_p5 }
  0x16   :  { %v36_v18 = vmax.f32 %v34_v10, %v35_v14  ;;  %v42_v19 = vrot.slane %v41_v15, 2  ;;  %v50_v20 = vmax.f32 %v48_v12, %v49_v16  ;;  %v56_v21 = vrot.slane %v55_v17, 2 }
  0x18   :  { %v37_v22 = vrot.slane %v36_v18, 1  ;;  %v43_v23 = vmax.f32 %v41_v15, %v42_v19  ;;  %v51_v24 = vrot.slane %v50_v20, 1  ;;  %v57_v25 = vmax.f32 %v55_v17, %v56_v21 }
  0x1a   :  { %v38_v26 = vmax.f32 %v36_v18, %v37_v22  ;;  %v44_v27 = vrot.slane %v43_v23, 1  ;;  %v52_v28 = vmax.f32 %v50_v20, %v51_v24  ;;  %v58_v29 = vrot.slane %v57_v25, 1 }
  0x1c   :  { %v45_v30 = vmax.f32 %v43_v23, %v44_v27  ;;  %v59_v31 = vmax.f32 %v57_v25, %v58_v29 }
  0x1e   :  { %v64_v32 = vcombine.low %v38_v26, %v45_v30  ;;  %v65_v33 = vcombine.low %v52_v28, %v59_v31 }
  0x20   :  { %v68_v34 = vsub.f32 %v23_v0, %v64_v32  ;;  %v69_v35 = vsub.f32 %v24_v1, %v65_v33 }
  0x22   :  { %v70_v36 = vmul.f32 2.0, %v68_v34  ;;  %v71_v37 = vmul.f32 2.0, %v69_v35 }
  0x24   :  { %v72_v38 = vmul.f32 1.442695, %v70_v36  ;;  %v74_v39 = vmul.f32 1.442695, %v71_v37 }
  0x26   :  { %149 = vpow2.f32 %v72_v38 }
  0x27   :  { %151 = vpow2.f32 %v74_v39 }
  0x33   :  { %v150_v40 = vpop.eup %149 }
  0x34   :  { %v152_v41 = vpop.eup %151  ;;  %v78_v42 = vcombine.high %v150_v40, %v150_v40  ;;  %v82_v43 = vsel %vm31_vm0, %v150_v40, 0.0 }
  0x35   :  { %v83_v44 = vrot.slane %v82_v43, 4  ;;  %v79_v45 = vcombine.high %v152_v41, %v152_v41  ;;  %v96_v46 = vsel %vm31_vm0, %v152_v41, 0.0 }
  0x36   :  { %v89_v47 = vsel %vm31_vm0, %v78_v42, 0.0  ;;  %v97_v48 = vrot.slane %v96_v46, 4 }
  0x37   :  { %v84_v49 = vadd.f32 %v83_v44, %v82_v43  ;;  %v90_v50 = vrot.slane %v89_v47, 4  ;;  %v103_v51 = vsel %vm31_vm0, %v79_v45, 0.0 }
  0x38   :  { %v98_v52 = vadd.f32 %v97_v48, %v96_v46  ;;  %v104_v53 = vrot.slane %v103_v51, 4 }
  0x39   :  { %v85_v54 = vrot.slane %v84_v49, 2  ;;  %v91_v55 = vadd.f32 %v90_v50, %v89_v47 }
  0x3a   :  { %v99_v56 = vrot.slane %v98_v52, 2  ;;  %v105_v57 = vadd.f32 %v104_v53, %v103_v51 }
  0x3b   :  { %v86_v58 = vadd.f32 %v85_v54, %v84_v49  ;;  %v92_v59 = vrot.slane %v91_v55, 2 }
  0x3c   :  { %v100_v60 = vadd.f32 %v99_v56, %v98_v52  ;;  %v106_v61 = vrot.slane %v105_v57, 2 }
  0x3d   :  { %v87_v62 = vrot.slane %v86_v58, 1  ;;  %v93_v63 = vadd.f32 %v92_v59, %v91_v55 }
  0x3e   :  { %v101_v0 = vrot.slane %v100_v60, 1  ;;  %v107_v1 = vadd.f32 %v106_v61, %v105_v57 }
  0x3f   :  { %v88_v2 = vadd.f32 %v87_v62, %v86_v58  ;;  %v94_v3 = vrot.slane %v93_v63, 1 }
  0x40   :  { %v102_v4 = vadd.f32 %v101_v0, %v100_v60  ;;  %v108_v5 = vrot.slane %v107_v1, 1 }
  0x41   :  { %v95_v6 = vadd.f32 %v94_v3, %v93_v63  ;;  %153 = vrcp.f32 %v88_v2 }
  0x42   :  { %v109_v7 = vadd.f32 %v108_v5, %v107_v1  ;;  %155 = vrcp.f32 %v102_v4 }
  0x43   :  { %157 = vrcp.f32 %v95_v6 }
  0x44   :  { %159 = vrcp.f32 %v109_v7 }
  0x4e   :  { %v154_v8 = vpop.eup %153 }
  0x4f   :  { %v156_v9 = vpop.eup %155 }
  0x50   :  { %v158_v10 = vpop.eup %157 }
  0x51   :  { %v160_v11 = vpop.eup %159  ;;  %v118_v12 = vcombine.low %v154_v8, %v158_v10 }
  0x52   :  { %v119_v13 = vcombine.low %v156_v9, %v160_v11 }
  0x53   :  { %v122_v14 = vmul.f32 %v150_v40, %v118_v12 }
  0x54   :  { %v123_v15 = vmul.f32 %v152_v41, %v119_v13 }
  0x55   :  { %124 = vst [vmem:[#allocation5] sm:$0xff] %v122_v14 }
  0x56   :  { %125 = vst [vmem:[#allocation5 + $0x8] sm:$0xff] %v123_v15 }
  0x57   :  { %192 = shalt.err (!%p189_p9)
}
  0x58   :  { %137 = dma.vmem_to_hbm [thread:$0]  %s132_s13, 256, %s240_s1, [#allocation4], %s206_s9, %s206_s9, %s207_s10  }
  0x59   :  { %203 = dma.done.wait [#allocation4], 256  }
  0x5a   :  { %204 = vsyncadd [#allocation4], 4294967040 }
  0x5b   :  { %141 = vsyncpa [#allocation3], 1 }
  0x5c   :  { %142 = vsyncpa [#allocation4], 1 }

</bundles_post_ra>
